<compile_context>
chip_gen: v7x
topology: tpu7x:2x2x1
jax: 0.10.0
libtpu: 0.0.40
codegen_flags: <defaults>
</compile_context>

<pallas_src>
import numpy as np
import jax
import jax.numpy as jnp
from jax.experimental import pallas as pl
from jax.experimental.pallas import tpu as pltpu

SEQ_LEN = 8
INPUT_DIM = 50
HIDDEN = 30
HP = 32                       # hidden padded to 32 so the 4 gates fill 128 lanes
LANES = 4 * HP                # 128
NUM_CLASSES = 5

# Packed slab row layout (all segment starts 8-aligned):
#   [  0: 32) W_hh   (gate-packed, transposed)
#   [ 32: 33) fused bias (b_ih + b_hh)
#   [ 40: 90) W_ih   (gate-packed, transposed)
#   [ 96:128) W_l^T  (lanes 0:5)
#   [128:129) b_l    (lanes 0:5)
WHH_ROW = 0
BIAS_ROW = 32
WIH_ROW = 40
WL_ROW = 96
BL_ROW = 128
PACK_ROWS = 136               # padded to a multiple of 8


def lstm_kernel(x_ref, w_ref, out_ref):
    """x_ref:(T,50)  w_ref:(136,128) packed slab  out_ref:(1,128).
    Gate order along lanes: i[0:32) f[32:64) g[64:96) o[96:128)."""
    T = x_ref.shape[0]

    whh = w_ref[WHH_ROW:WHH_ROW + HP, :]            # (32, 128), pad rows/cols zero
    b = w_ref[BIAS_ROW:BIAS_ROW + 1, :]             # (1, 128)
    wih = w_ref[WIH_ROW:WIH_ROW + INPUT_DIM, :]     # (50, 128)
    wl = w_ref[WL_ROW:WL_ROW + HP, :]               # (32, 128), lanes 5: are zero
    bl = w_ref[BL_ROW:BL_ROW + 1, :]                # (1, 128)

    # Input projection + fused bias, off the recurrent chain: one lane-dense
    # (T,50)x(50,128) matmul.
    pre = jnp.dot(x_ref[...], wih, preferred_element_type=jnp.float32) + b  # (T,128)

    lane = jax.lax.broadcasted_iota(jnp.int32, (1, LANES), 1)
    tanh_lanes = (lane >= 2 * HP) & (lane < 3 * HP)   # g-gate lanes
    cls_lanes = lane < NUM_CLASSES

    h = jnp.zeros((1, HP), jnp.float32)
    c = jnp.zeros((1, HP), jnp.float32)
    s = jnp.zeros((1, HP), jnp.float32)

    # Fully unrolled recurrence (T small & static). Padded lanes stay exactly
    # zero: gate pre-activation is 0 there -> sigmoid(0)=0.5, tanh(0)=0, so
    # c_pad = 0.5*c_pad (stays 0) and h_pad = 0.5*tanh(0) = 0.
    for t in range(T):
        g = jnp.dot(h, whh, preferred_element_type=jnp.float32) + pre[t:t + 1, :]
        # One full-width tanh push per step; sigmoid via 0.5*(1+tanh(x/2)).
        arg = jnp.where(tanh_lanes, g, 0.5 * g)
        tg = jnp.tanh(arg)
        act = jnp.where(tanh_lanes, tg, 0.5 * (tg + 1.0))
        i_g = act[:, 0 * HP:1 * HP]
        f_g = act[:, 1 * HP:2 * HP]
        g_g = act[:, 2 * HP:3 * HP]
        o_g = act[:, 3 * HP:4 * HP]
        c = f_g * c + i_g * g_g
        h = o_g * jnp.tanh(c)
        s = s + h

    # Linear(30 -> 5) on the time-summed hidden state, then exact softmax.
    logits = jnp.dot(s, wl, preferred_element_type=jnp.float32) + bl   # (1,128)
    logits = jnp.where(cls_lanes, logits, jnp.float32(-1e30))
    m = jnp.max(logits, axis=1, keepdims=True)
    e = jnp.exp(logits - m)
    out_ref[...] = e / jnp.sum(e, axis=1, keepdims=True)


def make_params(key):
    ks = jax.random.split(key, 6)
    bound = 1.0 / np.sqrt(np.float32(HIDDEN))
    u = lambda k, s: jax.random.uniform(k, s, jnp.float32, -bound, bound)
    return dict(
        w_ih=u(ks[0], (4 * HIDDEN, INPUT_DIM)),    # PyTorch weight_ih_l0
        w_hh=u(ks[1], (4 * HIDDEN, HIDDEN)),       # PyTorch weight_hh_l0
        b_ih=u(ks[2], (4 * HIDDEN,)),
        b_hh=u(ks[3], (4 * HIDDEN,)),
        w_l=u(ks[4], (NUM_CLASSES, HIDDEN)),       # nn.Linear(30, 5).weight
        b_l=u(ks[5], (NUM_CLASSES,)),
    )


def pack_params(params):
    """Host-side, one-time packing of all weights into a single lane-dense
    (136,128) slab. Done once; NOT on the per-call path."""
    w_ih = np.asarray(params["w_ih"], np.float32).reshape(4, HIDDEN, INPUT_DIM)
    w_hh = np.asarray(params["w_hh"], np.float32).reshape(4, HIDDEN, HIDDEN)
    bias = (np.asarray(params["b_ih"], np.float32)
            + np.asarray(params["b_hh"], np.float32)).reshape(4, HIDDEN)
    w_l = np.asarray(params["w_l"], np.float32)     # (5, 30)
    b_l = np.asarray(params["b_l"], np.float32)     # (5,)

    wpack = np.zeros((PACK_ROWS, LANES), np.float32)
    for g in range(4):          # gate order i, f, g, o
        lo = g * HP
        wpack[WHH_ROW:WHH_ROW + HIDDEN, lo:lo + HIDDEN] = w_hh[g].T
        wpack[BIAS_ROW, lo:lo + HIDDEN] = bias[g]
        wpack[WIH_ROW:WIH_ROW + INPUT_DIM, lo:lo + HIDDEN] = w_ih[g].T
    wpack[WL_ROW:WL_ROW + HIDDEN, 0:NUM_CLASSES] = w_l.T
    wpack[BL_ROW, 0:NUM_CLASSES] = b_l
    return jnp.asarray(wpack)


def _forward(x2, wpack):
    out = pl.pallas_call(
        lstm_kernel,
        out_shape=jax.ShapeDtypeStruct((1, LANES), jnp.float32),
        in_specs=[pl.BlockSpec(memory_space=pltpu.MemorySpace.VMEM)] * 2,
        out_specs=pl.BlockSpec(memory_space=pltpu.MemorySpace.VMEM),
    )(x2, wpack)
    return out[:, :NUM_CLASSES]


lstm_forward = jax.jit(_forward)


def reference_forward(x, params):
    """Pure-JAX replica of the PyTorch module's forward for verification."""
    T = x.shape[0]
    x2 = x.reshape(T, INPUT_DIM)
    w_ih, w_hh = params["w_ih"], params["w_hh"]
    b = params["b_ih"] + params["b_hh"]
    h = jnp.zeros((HIDDEN,), jnp.float32)
    c = jnp.zeros((HIDDEN,), jnp.float32)
    outs = []
    for t in range(T):
        gates = x2[t] @ w_ih.T + h @ w_hh.T + b
        i_g = jax.nn.sigmoid(gates[0:HIDDEN])
        f_g = jax.nn.sigmoid(gates[HIDDEN:2 * HIDDEN])
        g_g = jnp.tanh(gates[2 * HIDDEN:3 * HIDDEN])
        o_g = jax.nn.sigmoid(gates[3 * HIDDEN:4 * HIDDEN])
        c = f_g * c + i_g * g_g
        h = o_g * jnp.tanh(c)
        outs.append(h)
    out = jnp.stack(outs, axis=0)               # (T, 30)
    out = out.sum(axis=0, keepdims=True)        # (1, 30)
    logits = out @ params["w_l"].T + params["b_l"]
    return jax.nn.softmax(logits, axis=1)


if __name__ == "__main__":
    key = jax.random.PRNGKey(0)
    k_x, k_p = jax.random.split(key)
    # Module-implied shapes: time-major (T=8, batch=1, input=50).
    x = jax.random.normal(k_x, (SEQ_LEN, 1, INPUT_DIM), jnp.float32)
    params = make_params(k_p)

    # One-time packing (hoisted off the per-call path).
    wpack = pack_params(params)
    x2 = x.reshape(SEQ_LEN, INPUT_DIM)

    out = lstm_forward(x2, wpack)
    out = jax.block_until_ready(out)

    ref = reference_forward(x, params)
    assert out.shape == (1, NUM_CLASSES)
    assert jnp.allclose(out, ref, rtol=1e-4, atol=1e-5), (out, ref)
    print("KERNEL_OK")
</pallas_src>

<mosaic_0001>
module attributes {stable_mosaic.version = 11 : i64} {
  func.func @lstm_kernel(%arg0: memref<8x50xf32, #tpu.memory_space<vmem>>, %arg1: memref<136x128xf32, #tpu.memory_space<vmem>>, %arg2: memref<1x128xf32, #tpu.memory_space<vmem>>) attributes {dimension_semantics = [], scalar_prefetch = 0 : i64, scratch_operands = 0 : i64, tpu.core_type = #tpu.core_type<tc>} {
    %c0 = arith.constant 0 : index
    %c0_0 = arith.constant 0 : index
    %0 = vector.load %arg1[%c0, %c0_0] : memref<136x128xf32, #tpu.memory_space<vmem>>, vector<32x128xf32>
    %c32 = arith.constant 32 : index
    %c0_1 = arith.constant 0 : index
    %1 = vector.load %arg1[%c32, %c0_1] : memref<136x128xf32, #tpu.memory_space<vmem>>, vector<1x128xf32>
    %c40 = arith.constant 40 : index
    %c0_2 = arith.constant 0 : index
    %2 = vector.load %arg1[%c40, %c0_2] : memref<136x128xf32, #tpu.memory_space<vmem>>, vector<50x128xf32>
    %c96 = arith.constant 96 : index
    %c0_3 = arith.constant 0 : index
    %3 = vector.load %arg1[%c96, %c0_3] : memref<136x128xf32, #tpu.memory_space<vmem>>, vector<32x128xf32>
    %c128 = arith.constant 128 : index
    %c0_4 = arith.constant 0 : index
    %4 = vector.load %arg1[%c128, %c0_4] : memref<136x128xf32, #tpu.memory_space<vmem>>, vector<1x128xf32>
    %c0_5 = arith.constant 0 : index
    %c0_6 = arith.constant 0 : index
    %5 = vector.load %arg0[%c0_5, %c0_6] : memref<8x50xf32, #tpu.memory_space<vmem>>, vector<8x50xf32>
    %cst = arith.constant dense<0.000000e+00> : vector<8x128xf32>
    %6 = tpu.matmul %5, %2, %cst {dimension_numbers = #tpu.dot_dimension_numbers<[1], [0], [0], [1], [0, 0, 1, 1], [], []>} : vector<8x50xf32>, vector<50x128xf32>, vector<8x128xf32> -> vector<8x128xf32>
    %7 = vector.broadcast %1 : vector<1x128xf32> to vector<8x128xf32>
    %8 = arith.addf %6, %7 : vector<8x128xf32>
    %9 = tpu.iota {dimensions = array<i32: 1>} : vector<1x128xi32>
    %c64_i32 = arith.constant 64 : i32
    %10 = vector.broadcast %c64_i32 : i32 to vector<1x128xi32>
    %11 = arith.cmpi sge, %9, %10 : vector<1x128xi32>
    %c96_i32 = arith.constant 96 : i32
    %12 = vector.broadcast %c96_i32 : i32 to vector<1x128xi32>
    %13 = arith.cmpi slt, %9, %12 : vector<1x128xi32>
    %14 = arith.andi %11, %13 : vector<1x128xi1>
    %c5_i32 = arith.constant 5 : i32
    %15 = vector.broadcast %c5_i32 : i32 to vector<1x128xi32>
    %16 = arith.cmpi slt, %9, %15 : vector<1x128xi32>
    %cst_7 = arith.constant 0.000000e+00 : f32
    %17 = vector.broadcast %cst_7 : f32 to vector<1x32xf32>
    %cst_8 = arith.constant 0.000000e+00 : f32
    %18 = vector.broadcast %cst_8 : f32 to vector<1x32xf32>
    %cst_9 = arith.constant 0.000000e+00 : f32
    %19 = vector.broadcast %cst_9 : f32 to vector<1x32xf32>
    %cst_10 = arith.constant dense<0.000000e+00> : vector<1x128xf32>
    %20 = tpu.matmul %17, %0, %cst_10 {dimension_numbers = #tpu.dot_dimension_numbers<[1], [0], [0], [1], [0, 0, 1, 1], [], []>} : vector<1x32xf32>, vector<32x128xf32>, vector<1x128xf32> -> vector<1x128xf32>
    %21 = vector.extract_strided_slice %8 {offsets = [0, 0], sizes = [1, 128], strides = [1, 1]} : vector<8x128xf32> to vector<1x128xf32>
    %22 = arith.addf %20, %21 : vector<1x128xf32>
    %cst_11 = arith.constant 5.000000e-01 : f32
    %23 = vector.broadcast %cst_11 : f32 to vector<1x128xf32>
    %24 = arith.mulf %23, %22 : vector<1x128xf32>
    %25 = arith.select %14, %22, %24 : vector<1x128xi1>, vector<1x128xf32>
    %26 = math.tanh %25 : vector<1x128xf32>
    %cst_12 = arith.constant 1.000000e+00 : f32
    %27 = vector.broadcast %cst_12 : f32 to vector<1x128xf32>
    %28 = arith.addf %26, %27 : vector<1x128xf32>
    %cst_13 = arith.constant 5.000000e-01 : f32
    %29 = vector.broadcast %cst_13 : f32 to vector<1x128xf32>
    %30 = arith.mulf %29, %28 : vector<1x128xf32>
    %31 = arith.select %14, %26, %30 : vector<1x128xi1>, vector<1x128xf32>
    %32 = vector.extract_strided_slice %31 {offsets = [0, 0], sizes = [1, 32], strides = [1, 1]} : vector<1x128xf32> to vector<1x32xf32>
    %33 = vector.extract_strided_slice %31 {offsets = [0, 32], sizes = [1, 32], strides = [1, 1]} : vector<1x128xf32> to vector<1x32xf32>
    %34 = vector.extract_strided_slice %31 {offsets = [0, 64], sizes = [1, 32], strides = [1, 1]} : vector<1x128xf32> to vector<1x32xf32>
    %35 = vector.extract_strided_slice %31 {offsets = [0, 96], sizes = [1, 32], strides = [1, 1]} : vector<1x128xf32> to vector<1x32xf32>
    %36 = arith.mulf %33, %18 : vector<1x32xf32>
    %37 = arith.mulf %32, %34 : vector<1x32xf32>
    %38 = arith.addf %36, %37 : vector<1x32xf32>
    %39 = math.tanh %38 : vector<1x32xf32>
    %40 = arith.mulf %35, %39 : vector<1x32xf32>
    %41 = arith.addf %19, %40 : vector<1x32xf32>
    %cst_14 = arith.constant dense<0.000000e+00> : vector<1x128xf32>
    %42 = tpu.matmul %40, %0, %cst_14 {dimension_numbers = #tpu.dot_dimension_numbers<[1], [0], [0], [1], [0, 0, 1, 1], [], []>} : vector<1x32xf32>, vector<32x128xf32>, vector<1x128xf32> -> vector<1x128xf32>
    %43 = vector.extract_strided_slice %8 {offsets = [1, 0], sizes = [1, 128], strides = [1, 1]} : vector<8x128xf32> to vector<1x128xf32>
    %44 = arith.addf %42, %43 : vector<1x128xf32>
    %cst_15 = arith.constant 5.000000e-01 : f32
    %45 = vector.broadcast %cst_15 : f32 to vector<1x128xf32>
    %46 = arith.mulf %45, %44 : vector<1x128xf32>
    %47 = arith.select %14, %44, %46 : vector<1x128xi1>, vector<1x128xf32>
    %48 = math.tanh %47 : vector<1x128xf32>
    %cst_16 = arith.constant 1.000000e+00 : f32
    %49 = vector.broadcast %cst_16 : f32 to vector<1x128xf32>
    %50 = arith.addf %48, %49 : vector<1x128xf32>
    %cst_17 = arith.constant 5.000000e-01 : f32
    %51 = vector.broadcast %cst_17 : f32 to vector<1x128xf32>
    %52 = arith.mulf %51, %50 : vector<1x128xf32>
    %53 = arith.select %14, %48, %52 : vector<1x128xi1>, vector<1x128xf32>
    %54 = vector.extract_strided_slice %53 {offsets = [0, 0], sizes = [1, 32], strides = [1, 1]} : vector<1x128xf32> to vector<1x32xf32>
    %55 = vector.extract_strided_slice %53 {offsets = [0, 32], sizes = [1, 32], strides = [1, 1]} : vector<1x128xf32> to vector<1x32xf32>
    %56 = vector.extract_strided_slice %53 {offsets = [0, 64], sizes = [1, 32], strides = [1, 1]} : vector<1x128xf32> to vector<1x32xf32>
    %57 = vector.extract_strided_slice %53 {offsets = [0, 96], sizes = [1, 32], strides = [1, 1]} : vector<1x128xf32> to vector<1x32xf32>
    %58 = arith.mulf %55, %38 : vector<1x32xf32>
    %59 = arith.mulf %54, %56 : vector<1x32xf32>
    %60 = arith.addf %58, %59 : vector<1x32xf32>
    %61 = math.tanh %60 : vector<1x32xf32>
    %62 = arith.mulf %57, %61 : vector<1x32xf32>
    %63 = arith.addf %41, %62 : vector<1x32xf32>
    %cst_18 = arith.constant dense<0.000000e+00> : vector<1x128xf32>
    %64 = tpu.matmul %62, %0, %cst_18 {dimension_numbers = #tpu.dot_dimension_numbers<[1], [0], [0], [1], [0, 0, 1, 1], [], []>} : vector<1x32xf32>, vector<32x128xf32>, vector<1x128xf32> -> vector<1x128xf32>
    %65 = vector.extract_strided_slice %8 {offsets = [2, 0], sizes = [1, 128], strides = [1, 1]} : vector<8x128xf32> to vector<1x128xf32>
    %66 = arith.addf %64, %65 : vector<1x128xf32>
    %cst_19 = arith.constant 5.000000e-01 : f32
    %67 = vector.broadcast %cst_19 : f32 to vector<1x128xf32>
    %68 = arith.mulf %67, %66 : vector<1x128xf32>
    %69 = arith.select %14, %66, %68 : vector<1x128xi1>, vector<1x128xf32>
    %70 = math.tanh %69 : vector<1x128xf32>
    %cst_20 = arith.constant 1.000000e+00 : f32
    %71 = vector.broadcast %cst_20 : f32 to vector<1x128xf32>
    %72 = arith.addf %70, %71 : vector<1x128xf32>
    %cst_21 = arith.constant 5.000000e-01 : f32
    %73 = vector.broadcast %cst_21 : f32 to vector<1x128xf32>
    %74 = arith.mulf %73, %72 : vector<1x128xf32>
    %75 = arith.select %14, %70, %74 : vector<1x128xi1>, vector<1x128xf32>
    %76 = vector.extract_strided_slice %75 {offsets = [0, 0], sizes = [1, 32], strides = [1, 1]} : vector<1x128xf32> to vector<1x32xf32>
    %77 = vector.extract_strided_slice %75 {offsets = [0, 32], sizes = [1, 32], strides = [1, 1]} : vector<1x128xf32> to vector<1x32xf32>
    %78 = vector.extract_strided_slice %75 {offsets = [0, 64], sizes = [1, 32], strides = [1, 1]} : vector<1x128xf32> to vector<1x32xf32>
    %79 = vector.extract_strided_slice %75 {offsets = [0, 96], sizes = [1, 32], strides = [1, 1]} : vector<1x128xf32> to vector<1x32xf32>
    %80 = arith.mulf %77, %60 : vector<1x32xf32>
    %81 = arith.mulf %76, %78 : vector<1x32xf32>
    %82 = arith.addf %80, %81 : vector<1x32xf32>
    %83 = math.tanh %82 : vector<1x32xf32>
    %84 = arith.mulf %79, %83 : vector<1x32xf32>
    %85 = arith.addf %63, %84 : vector<1x32xf32>
    %cst_22 = arith.constant dense<0.000000e+00> : vector<1x128xf32>
    %86 = tpu.matmul %84, %0, %cst_22 {dimension_numbers = #tpu.dot_dimension_numbers<[1], [0], [0], [1], [0, 0, 1, 1], [], []>} : vector<1x32xf32>, vector<32x128xf32>, vector<1x128xf32> -> vector<1x128xf32>
    %87 = vector.extract_strided_slice %8 {offsets = [3, 0], sizes = [1, 128], strides = [1, 1]} : vector<8x128xf32> to vector<1x128xf32>
    %88 = arith.addf %86, %87 : vector<1x128xf32>
    %cst_23 = arith.constant 5.000000e-01 : f32
    %89 = vector.broadcast %cst_23 : f32 to vector<1x128xf32>
    %90 = arith.mulf %89, %88 : vector<1x128xf32>
    %91 = arith.select %14, %88, %90 : vector<1x128xi1>, vector<1x128xf32>
    %92 = math.tanh %91 : vector<1x128xf32>
    %cst_24 = arith.constant 1.000000e+00 : f32
    %93 = vector.broadcast %cst_24 : f32 to vector<1x128xf32>
    %94 = arith.addf %92, %93 : vector<1x128xf32>
    %cst_25 = arith.constant 5.000000e-01 : f32
    %95 = vector.broadcast %cst_25 : f32 to vector<1x128xf32>
    %96 = arith.mulf %95, %94 : vector<1x128xf32>
    %97 = arith.select %14, %92, %96 : vector<1x128xi1>, vector<1x128xf32>
    %98 = vector.extract_strided_slice %97 {offsets = [0, 0], sizes = [1, 32], strides = [1, 1]} : vector<1x128xf32> to vector<1x32xf32>
    %99 = vector.extract_strided_slice %97 {offsets = [0, 32], sizes = [1, 32], strides = [1, 1]} : vector<1x128xf32> to vector<1x32xf32>
    %100 = vector.extract_strided_slice %97 {offsets = [0, 64], sizes = [1, 32], strides = [1, 1]} : vector<1x128xf32> to vector<1x32xf32>
    %101 = vector.extract_strided_slice %97 {offsets = [0, 96], sizes = [1, 32], strides = [1, 1]} : vector<1x128xf32> to vector<1x32xf32>
    %102 = arith.mulf %99, %82 : vector<1x32xf32>
    %103 = arith.mulf %98, %100 : vector<1x32xf32>
    %104 = arith.addf %102, %103 : vector<1x32xf32>
    %105 = math.tanh %104 : vector<1x32xf32>
    %106 = arith.mulf %101, %105 : vector<1x32xf32>
    %107 = arith.addf %85, %106 : vector<1x32xf32>
    %cst_26 = arith.constant dense<0.000000e+00> : vector<1x128xf32>
    %108 = tpu.matmul %106, %0, %cst_26 {dimension_numbers = #tpu.dot_dimension_numbers<[1], [0], [0], [1], [0, 0, 1, 1], [], []>} : vector<1x32xf32>, vector<32x128xf32>, vector<1x128xf32> -> vector<1x128xf32>
    %109 = vector.extract_strided_slice %8 {offsets = [4, 0], sizes = [1, 128], strides = [1, 1]} : vector<8x128xf32> to vector<1x128xf32>
    %110 = arith.addf %108, %109 : vector<1x128xf32>
    %cst_27 = arith.constant 5.000000e-01 : f32
    %111 = vector.broadcast %cst_27 : f32 to vector<1x128xf32>
    %112 = arith.mulf %111, %110 : vector<1x128xf32>
    %113 = arith.select %14, %110, %112 : vector<1x128xi1>, vector<1x128xf32>
    %114 = math.tanh %113 : vector<1x128xf32>
    %cst_28 = arith.constant 1.000000e+00 : f32
    %115 = vector.broadcast %cst_28 : f32 to vector<1x128xf32>
    %116 = arith.addf %114, %115 : vector<1x128xf32>
    %cst_29 = arith.constant 5.000000e-01 : f32
    %117 = vector.broadcast %cst_29 : f32 to vector<1x128xf32>
    %118 = arith.mulf %117, %116 : vector<1x128xf32>
    %119 = arith.select %14, %114, %118 : vector<1x128xi1>, vector<1x128xf32>
    %120 = vector.extract_strided_slice %119 {offsets = [0, 0], sizes = [1, 32], strides = [1, 1]} : vector<1x128xf32> to vector<1x32xf32>
    %121 = vector.extract_strided_slice %119 {offsets = [0, 32], sizes = [1, 32], strides = [1, 1]} : vector<1x128xf32> to vector<1x32xf32>
    %122 = vector.extract_strided_slice %119 {offsets = [0, 64], sizes = [1, 32], strides = [1, 1]} : vector<1x128xf32> to vector<1x32xf32>
    %123 = vector.extract_strided_slice %119 {offsets = [0, 96], sizes = [1, 32], strides = [1, 1]} : vector<1x128xf32> to vector<1x32xf32>
    %124 = arith.mulf %121, %104 : vector<1x32xf32>
    %125 = arith.mulf %120, %122 : vector<1x32xf32>
    %126 = arith.addf %124, %125 : vector<1x32xf32>
    %127 = math.tanh %126 : vector<1x32xf32>
    %128 = arith.mulf %123, %127 : vector<1x32xf32>
    %129 = arith.addf %107, %128 : vector<1x32xf32>
    %cst_30 = arith.constant dense<0.000000e+00> : vector<1x128xf32>
    %130 = tpu.matmul %128, %0, %cst_30 {dimension_numbers = #tpu.dot_dimension_numbers<[1], [0], [0], [1], [0, 0, 1, 1], [], []>} : vector<1x32xf32>, vector<32x128xf32>, vector<1x128xf32> -> vector<1x128xf32>
    %131 = vector.extract_strided_slice %8 {offsets = [5, 0], sizes = [1, 128], strides = [1, 1]} : vector<8x128xf32> to vector<1x128xf32>
    %132 = arith.addf %130, %131 : vector<1x128xf32>
    %cst_31 = arith.constant 5.000000e-01 : f32
    %133 = vector.broadcast %cst_31 : f32 to vector<1x128xf32>
    %134 = arith.mulf %133, %132 : vector<1x128xf32>
    %135 = arith.select %14, %132, %134 : vector<1x128xi1>, vector<1x128xf32>
    %136 = math.tanh %135 : vector<1x128xf32>
    %cst_32 = arith.constant 1.000000e+00 : f32
    %137 = vector.broadcast %cst_32 : f32 to vector<1x128xf32>
    %138 = arith.addf %136, %137 : vector<1x128xf32>
    %cst_33 = arith.constant 5.000000e-01 : f32
    %139 = vector.broadcast %cst_33 : f32 to vector<1x128xf32>
    %140 = arith.mulf %139, %138 : vector<1x128xf32>
    %141 = arith.select %14, %136, %140 : vector<1x128xi1>, vector<1x128xf32>
    %142 = vector.extract_strided_slice %141 {offsets = [0, 0], sizes = [1, 32], strides = [1, 1]} : vector<1x128xf32> to vector<1x32xf32>
    %143 = vector.extract_strided_slice %141 {offsets = [0, 32], sizes = [1, 32], strides = [1, 1]} : vector<1x128xf32> to vector<1x32xf32>
    %144 = vector.extract_strided_slice %141 {offsets = [0, 64], sizes = [1, 32], strides = [1, 1]} : vector<1x128xf32> to vector<1x32xf32>
    %145 = vector.extract_strided_slice %141 {offsets = [0, 96], sizes = [1, 32], strides = [1, 1]} : vector<1x128xf32> to vector<1x32xf32>
    %146 = arith.mulf %143, %126 : vector<1x32xf32>
    %147 = arith.mulf %142, %144 : vector<1x32xf32>
    %148 = arith.addf %146, %147 : vector<1x32xf32>
    %149 = math.tanh %148 : vector<1x32xf32>
    %150 = arith.mulf %145, %149 : vector<1x32xf32>
    %151 = arith.addf %129, %150 : vector<1x32xf32>
    %cst_34 = arith.constant dense<0.000000e+00> : vector<1x128xf32>
    %152 = tpu.matmul %150, %0, %cst_34 {dimension_numbers = #tpu.dot_dimension_numbers<[1], [0], [0], [1], [0, 0, 1, 1], [], []>} : vector<1x32xf32>, vector<32x128xf32>, vector<1x128xf32> -> vector<1x128xf32>
    %153 = vector.extract_strided_slice %8 {offsets = [6, 0], sizes = [1, 128], strides = [1, 1]} : vector<8x128xf32> to vector<1x128xf32>
    %154 = arith.addf %152, %153 : vector<1x128xf32>
    %cst_35 = arith.constant 5.000000e-01 : f32
    %155 = vector.broadcast %cst_35 : f32 to vector<1x128xf32>
    %156 = arith.mulf %155, %154 : vector<1x128xf32>
    %157 = arith.select %14, %154, %156 : vector<1x128xi1>, vector<1x128xf32>
    %158 = math.tanh %157 : vector<1x128xf32>
    %cst_36 = arith.constant 1.000000e+00 : f32
    %159 = vector.broadcast %cst_36 : f32 to vector<1x128xf32>
    %160 = arith.addf %158, %159 : vector<1x128xf32>
    %cst_37 = arith.constant 5.000000e-01 : f32
    %161 = vector.broadcast %cst_37 : f32 to vector<1x128xf32>
    %162 = arith.mulf %161, %160 : vector<1x128xf32>
    %163 = arith.select %14, %158, %162 : vector<1x128xi1>, vector<1x128xf32>
    %164 = vector.extract_strided_slice %163 {offsets = [0, 0], sizes = [1, 32], strides = [1, 1]} : vector<1x128xf32> to vector<1x32xf32>
    %165 = vector.extract_strided_slice %163 {offsets = [0, 32], sizes = [1, 32], strides = [1, 1]} : vector<1x128xf32> to vector<1x32xf32>
    %166 = vector.extract_strided_slice %163 {offsets = [0, 64], sizes = [1, 32], strides = [1, 1]} : vector<1x128xf32> to vector<1x32xf32>
    %167 = vector.extract_strided_slice %163 {offsets = [0, 96], sizes = [1, 32], strides = [1, 1]} : vector<1x128xf32> to vector<1x32xf32>
    %168 = arith.mulf %165, %148 : vector<1x32xf32>
    %169 = arith.mulf %164, %166 : vector<1x32xf32>
    %170 = arith.addf %168, %169 : vector<1x32xf32>
    %171 = math.tanh %170 : vector<1x32xf32>
    %172 = arith.mulf %167, %171 : vector<1x32xf32>
    %173 = arith.addf %151, %172 : vector<1x32xf32>
    %cst_38 = arith.constant dense<0.000000e+00> : vector<1x128xf32>
    %174 = tpu.matmul %172, %0, %cst_38 {dimension_numbers = #tpu.dot_dimension_numbers<[1], [0], [0], [1], [0, 0, 1, 1], [], []>} : vector<1x32xf32>, vector<32x128xf32>, vector<1x128xf32> -> vector<1x128xf32>
    %175 = vector.extract_strided_slice %8 {offsets = [7, 0], sizes = [1, 128], strides = [1, 1]} : vector<8x128xf32> to vector<1x128xf32>
    %176 = arith.addf %174, %175 : vector<1x128xf32>
    %cst_39 = arith.constant 5.000000e-01 : f32
    %177 = vector.broadcast %cst_39 : f32 to vector<1x128xf32>
    %178 = arith.mulf %177, %176 : vector<1x128xf32>
    %179 = arith.select %14, %176, %178 : vector<1x128xi1>, vector<1x128xf32>
    %180 = math.tanh %179 : vector<1x128xf32>
    %cst_40 = arith.constant 1.000000e+00 : f32
    %181 = vector.broadcast %cst_40 : f32 to vector<1x128xf32>
    %182 = arith.addf %180, %181 : vector<1x128xf32>
    %cst_41 = arith.constant 5.000000e-01 : f32
    %183 = vector.broadcast %cst_41 : f32 to vector<1x128xf32>
    %184 = arith.mulf %183, %182 : vector<1x128xf32>
    %185 = arith.select %14, %180, %184 : vector<1x128xi1>, vector<1x128xf32>
    %186 = vector.extract_strided_slice %185 {offsets = [0, 0], sizes = [1, 32], strides = [1, 1]} : vector<1x128xf32> to vector<1x32xf32>
    %187 = vector.extract_strided_slice %185 {offsets = [0, 32], sizes = [1, 32], strides = [1, 1]} : vector<1x128xf32> to vector<1x32xf32>
    %188 = vector.extract_strided_slice %185 {offsets = [0, 64], sizes = [1, 32], strides = [1, 1]} : vector<1x128xf32> to vector<1x32xf32>
    %189 = vector.extract_strided_slice %185 {offsets = [0, 96], sizes = [1, 32], strides = [1, 1]} : vector<1x128xf32> to vector<1x32xf32>
    %190 = arith.mulf %187, %170 : vector<1x32xf32>
    %191 = arith.mulf %186, %188 : vector<1x32xf32>
    %192 = arith.addf %190, %191 : vector<1x32xf32>
    %193 = math.tanh %192 : vector<1x32xf32>
    %194 = arith.mulf %189, %193 : vector<1x32xf32>
    %195 = arith.addf %173, %194 : vector<1x32xf32>
    %cst_42 = arith.constant dense<0.000000e+00> : vector<1x128xf32>
    %196 = tpu.matmul %195, %3, %cst_42 {dimension_numbers = #tpu.dot_dimension_numbers<[1], [0], [0], [1], [0, 0, 1, 1], [], []>} : vector<1x32xf32>, vector<32x128xf32>, vector<1x128xf32> -> vector<1x128xf32>
    %197 = arith.addf %196, %4 : vector<1x128xf32>
    %cst_43 = arith.constant -1.000000e+30 : f32
    %198 = vector.broadcast %cst_43 : f32 to vector<1x128xf32>
    %199 = arith.select %16, %197, %198 : vector<1x128xi1>, vector<1x128xf32>
    %cst_44 = arith.constant dense<0xFF800000> : vector<1xf32>
    %200 = vector.multi_reduction <maximumf>, %199, %cst_44 [1] : vector<1x128xf32> to vector<1xf32>
    %201 = vector.shape_cast %200 : vector<1xf32> to vector<1x1xf32>
    %202 = vector.broadcast %201 : vector<1x1xf32> to vector<1x128xf32>
    %203 = arith.subf %199, %202 : vector<1x128xf32>
    %204 = math.exp %203 : vector<1x128xf32>
    %cst_45 = arith.constant dense<0.000000e+00> : vector<1xf32>
    %205 = vector.multi_reduction <add>, %204, %cst_45 [1] : vector<1x128xf32> to vector<1xf32>
    %206 = vector.shape_cast %205 : vector<1xf32> to vector<1x1xf32>
    %207 = vector.broadcast %206 : vector<1x1xf32> to vector<1x128xf32>
    %208 = arith.divf %204, %207 : vector<1x128xf32>
    %c0_46 = arith.constant 0 : index
    %c0_47 = arith.constant 0 : index
    %209 = vector.load %arg2[%c0_46, %c0_47] : memref<1x128xf32, #tpu.memory_space<vmem>>, vector<1x128xf32>
    tpu.vector_store %arg2[%c0_46, %c0_47], %208 {strides = array<i32>} : memref<1x128xf32, #tpu.memory_space<vmem>>, vector<1x128xf32>,
    return
  }
}

</mosaic_0001>

<bundles_post_ra>
// kernel: _forward.1
= control target key start
LH: loop header
LB: loop body
LE: loop exit
PB: predicated region body
PF: predicated region fallthrough
CT: control target
= control target key end

     0   :  { %7 = vsyncpa [#allocation3], 0  ;;  %s1642_s0 = inlined_call_operand.hbm [shape: f32[8,50], index: 0, kind: input, shape index: {}]   ;;  %s1643_s1 = inlined_call_operand.hbm [shape: f32[136,128], index: 1, kind: input, shape index: {}]   ;;  %s1644_s2 = inlined_call_operand.hbm [shape: f32[1,128], index: 2, kind: output, shape index: {}]  }
   0x1   :  { %8 = vsyncpa [#allocation6], 0 }
   0x2   :  { %9 = vsyncpa [#allocation4], 0  ;;  %s1416_s9 = smov [#allocation2]   ;;  %s1417_s11 = smov [#allocation5]  }
   0x3   :  { %s16_s10 = sshll.u32 %s1416_s9, 4  ;;  %s25_s12 = sshll.u32 %s1417_s11, 4  ;;  %s17_s10 = int_to_ptr.vmem [resolvable:$true] %s16_s10  ;;  %s1441_s12 = int_to_ptr.vmem [resolvable:$true] %s25_s12 }
   0x4   :  { %s1344_s15 = scalar_lea.hbm %s1642_s0, 128 }
   0x5   :  { %p1345_p0 = scmp.ne.s32.totalorder %s1642_s0, %s1344_s15  ;;  %p1348_p1 = scmp.lt.u32.totalorder %s1344_s15, %s1642_s0 }
   0x7   :  { %p1350_p2 = pnand %p1348_p1, %p1345_p0 }
   0x9   :  { %1353 = shalt.err (!%p1350_p2)
}
   0xa   :  { %s1354_s20 = scalar_lea.vmem %s17_s10, 128  ;;  %p1359_p4 = scmp.lt.s32.totalorder %s17_s10, %s17_s10 }
   0xb   :  { %p1355_p3 = scmp.ne.s32.totalorder %s17_s10, %s1354_s20  ;;  %p1360_p5 = scmp.lt.s32.totalorder %s1354_s20, %s1354_s20 }
   0xd   :  { %p1361_p6 = por %p1360_p5, %p1359_p4 }
   0xf   :  { %p1362_p7 = pnand %p1361_p6, %p1355_p3 }
  0x11   :  { %1365 = shalt.err (!%p1362_p7)
}
  0x12   :  { %19 = dma.hbm_to_vmem [thread:$0]  %s1642_s0, 128, %s17_s10, [#allocation3]  }
  0x13   :  { %s1366_s25 = scalar_lea.hbm %s1643_s1, 2176 }
  0x14   :  { %p1367_p8 = scmp.ne.s32.totalorder %s1643_s1, %s1366_s25  ;;  %p1370_p9 = scmp.lt.u32.totalorder %s1366_s25, %s1643_s1 }
  0x16   :  { %p1372_p10 = pnand %p1370_p9, %p1367_p8 }
  0x18   :  { %1375 = shalt.err (!%p1372_p10)
}
  0x19   :  { %s1376_s30 = scalar_lea.vmem %s1441_s12, 2176  ;;  %p1381_p12 = scmp.lt.s32.totalorder %s1441_s12, %s1441_s12 }
  0x1a   :  { %p1377_p11 = scmp.ne.s32.totalorder %s1441_s12, %s1376_s30  ;;  %p1382_p13 = scmp.lt.s32.totalorder %s1376_s30, %s1376_s30 }
  0x1c   :  { %p1383_p0 = por %p1382_p13, %p1381_p12 }
  0x1e   :  { %p1384_p1 = pnand %p1383_p0, %p1377_p11 }
  0x20   :  { %1387 = shalt.err (!%p1384_p1)
}
  0x21   :  { %s1418_s0 = smov 128   ;;  %s1419_s3 = smov 8  }
  0x22   :  { %31 = dma.hbm_to_vmem [thread:$0]  %s1643_s1, 2176, %s1441_s12, [#allocation6], %s1418_s0, %s1418_s0, %s1419_s3  }
  0x23   :  { %1410 = dma.done.wait [#allocation3], 128  }
  0x24   :  { %1411 = vsyncadd [#allocation3], 4294967168 }
  0x25   :  { %1412 = dma.done.wait [#allocation6], 2176  }
  0x26   :  { %1413 = vsyncadd [#allocation6], 4294965120  ;;  %v1420_v0 = vmov 0.0|0.0   ;;  %vm1421_vm0 = vmmov 0   ;;  %v1422_v1 = vmov 0.0   ;;  %v43_v2 = vld [vmem:[#allocation5 + $0x28] sm:$0xff]  ;;  %v138_v19 = vlaneseq }
  0x27   :  { %1235 = vmatprep.subr.bf16.mxu0 %v1420_v0  ;;  %1244 = vmatprep.subr.bf16.mxu1 %v1420_v0  ;;  %v44_v3 = vld [vmem:[#allocation5 + $0x30] sm:$0xff]  ;;  %v45_v4 = vld [vmem:[#allocation5 + $0x38] sm:$0xff]  ;;  %v46_v6 = vld [vmem:[#allocation5 + $0x40] sm:$0xff]  ;;  %vm64_vm1 = vcmask 1041408   ;;  %vm60_vm2 = vcmask 408576   ;;  %s1423_s1 = smov 64  }
  0x28   :  { %1133 = vmatprep.mubr.msk.f32.mxu0 %vm1421_vm0, %v1422_v1  ;;  %1144 = vmatprep.mubr.msk.f32.mxu1 %vm1421_vm0, %v1422_v1  ;;  %v1236_v5 = vpack.c.bf16 %v44_v3, %v43_v2  ;;  %v38_v7 = vld [vmem:[#allocation5] sm:$0xff]  ;;  %v39_v8 = vld [vmem:[#allocation5 + $0x8] sm:$0xff]  ;;  %v40_v10 = vld [vmem:[#allocation5 + $0x10] sm:$0xff]  ;;  %v1239_v11 = vpack.c.bf16 %v46_v6, %v45_v4  ;;  %v1503_v22 = vand.u32 127, %v138_v19  ;;  %s1424_s6 = smov 32   ;;  %vm144_vm6 = vcmask 261120  }
  0x29   :  { %v1478_v9 = vpack.c.bf16 %v39_v8, %v38_v7  ;;  %v41_v12 = vld [vmem:[#allocation5 + $0x18] sm:$0xff]  ;;  %v47_v13 = vld [vmem:[#allocation5 + $0x48] sm:$0xff]  ;;  %v48_v14 = vld [vmem:[#allocation5 + $0x50] sm:$0xff]  ;;  %vm1026_vm8 = vcmask 1040384   ;;  %s1425_s7 = smov [#allocation7]  }
  0x2a   :  { %1237 = vmatpush3.bf16.msra.mxu0 %v1236_v5  ;;  %v1482_v15 = vpack.c.bf16 %v41_v12, %v40_v10  ;;  %v1242_v16 = vpack.c.bf16 %v48_v14, %v47_v13  ;;  %v49_v17 = vld [vmem:[#allocation5 + $0x58] sm:$0x3]  ;;  %v1055_v23 = vld [vmem:[#allocation5 + $0x20] ss:$0 sm:$0xff]  ;;  %vm140_vm3 = vcmp.ge.s32.totalorder %v1503_v22, 64  ;;  %vm141_vm4 = vcmp.lt.s32.totalorder %v1503_v22, 96 }
  0x2b   :  { %1238 = vmatprep.subr.bf16.mxu0 %v1420_v0  ;;  %1246 = vmatpush3.bf16.msra.mxu1 %v1478_v9  ;;  %v55_v18 = vld [vmem:[#allocation2] sm:$0xff]  ;;  %vm1510_vm5 = vmand %vm140_vm3, %vm141_vm4  ;;  %vm143_vm7 = vcmp.lt.s32.totalorder %v1503_v22, 5  ;;  %s1045_s8 = sshll.u32 %s1425_s7, 4  ;;  %s1046_s8 = int_to_ptr.vmem [resolvable:$true] %s1045_s8 }
  0x2c   :  { %1247 = vmatprep.subr.bf16.mxu1 %v1420_v0  ;;  %s1388_s9 = scalar_lea.vmem %s1046_s8, 16  ;;  %s1392_s10 = scalar_lea.vmem %s1046_s8, 32 }
  0x2d   :  { %p1389_p2 = scmp.ne.s32.totalorder %s1046_s8, %s1388_s9  ;;  %p1393_p3 = scmp.lt.s32.totalorder %s1046_s8, %s1046_s8 }
  0x2e   :  { %1240 = vmatpush3.bf16.msra.mxu0 %v1239_v11  ;;  %p1394_p4 = scmp.lt.s32.totalorder %s1392_s10, %s1388_s9 }
  0x2f   :  { %1241 = vmatprep.subr.bf16.mxu0 %v1420_v0  ;;  %1249 = vmatpush3.bf16.msra.mxu1 %v1482_v15 }
  0x30   :  { %1250 = vmatprep.subr.bf16.mxu1 %v1420_v0  ;;  %p1395_p5 = por %p1394_p4, %p1393_p3 }
  0x32   :  { %1243 = vmatpush3.bf16.msra.mxu0 %v1242_v16  ;;  %1145 = vmatmul.mubr.f32.vlgmr.msra.gmra.mrb[0].mxu1 %v1422_v1  ;;  %p1396_p6 = pnand %p1395_p5, %p1389_p2 }
  0x33   :  { %1131 = vmatprep.subr.mxu0 %v1422_v1  ;;  %1252 = vmatpush3.bf16.msra.mxu1 %v1478_v9 }
  0x34   :  { %1253 = vmatprep.subr.bf16.mxu1 %v1420_v0  ;;  %1155 = vmatprep.mubr.msk.f32.mxu1 %vm1421_vm0, %v1422_v1 }
  0x36   :  { %1132 = vmatpush3.msk.msra.mxu0 %vm64_vm1, %v49_v17 }
  0x37   :  { %1134 = vmatmul.mubr.msk.f32.vlgmr.msra.gmra.mrb[0].mxu0 %vm60_vm2, %v55_v18  ;;  %1255 = vmatpush3.bf16.msra.mxu1 %v1482_v15 }
  0x38   :  { %1256 = vmatprep.subr.bf16.mxu0 %v1420_v0  ;;  %1166 = vmatprep.mubr.msk.f32.mxu0 %vm1421_vm0, %v1422_v1 }
  0x39   :  { %1258 = vmatpush3.bf16.msra.mxu0 %v1478_v9  ;;  %1262 = vmatprep.subr.bf16.mxu1 %v1420_v0 }
  0x3a   :  { %1259 = vmatprep.subr.bf16.mxu0 %v1420_v0 }
  0x3d   :  { %1261 = vmatpush3.bf16.msra.mxu0 %v1482_v15 }
  0x3e   :  { %1268 = vmatprep.subr.bf16.mxu0 %v1420_v0 }
 0x105   :  { %v214_v20 = vpop.f32.mrb[0].mxu1 }
 0x106   :  { %v1146_v21 = vpop.f32.mrb[1].mxu1 }
 0x10a   :  { %v134_v24 = vpop.f32.mrb[0].mxu0 }
 0x10b   :  { %v1505_v25 = vadd.f32 %v1055_v23, %v134_v24  ;;  %v1135_v26 = vpop.f32.mrb[1].mxu0 }
 0x10d   :  { %v215_v27 = vadd.f32 %v214_v20, %v1505_v25  ;;  %v246_v44 = vrot.slane %v1505_v25, 1  ;;  %v347_v63 = vrot.slane %v1505_v25, 2  ;;  %v448_v26 = vrot.slane %v1505_v25, 3 }
 0x10f   :  { %v218_v29 = vmul.f32 0.5, %v215_v27 }
 0x111   :  { %v219_v30 = vsel %vm1510_vm5, %v215_v27, %v218_v29 }
 0x112   :  { %1308 = vtanh.f32 %v219_v30 }
 0x11c   :  { %v1309_v31 = vpop.eup %1308 }
 0x11d   :  { %v221_v32 = vadd.f32 1.0, %v1309_v31 }
 0x11f   :  { %v222_v33 = vmul.f32 0.5, %v221_v32 }
 0x121   :  { %v223_v34 = vsel %vm1510_vm5, %v1309_v31, %v222_v33 }
 0x122   :  { %226 = vrot.lane.b32.xlu0 %v223_v34, %s1423_s1  ;;  %v224_v37 = vmul.f32 0.0, %v223_v34 }
 0x194   :  { %v227_v35 = vpop.permute.xlu0 %226 }
 0x195   :  { %v229_v36 = vmul.f32 %v227_v35, %v223_v34 }
 0x197   :  { %231 = vrot.lane.b32.xlu0 %v229_v36, %s1424_s6 }
 0x209   :  { %v232_v38 = vpop.permute.xlu0 %231 }
 0x20a   :  { %v234_v39 = vadd.f32 %v232_v38, %v224_v37 }
 0x20c   :  { %1310 = vtanh.f32 %v234_v39 }
 0x216   :  { %v1311_v40 = vpop.eup %1310 }
 0x217   :  { %237 = vrot.lane.b32.xlu1 %v1311_v40, %s1423_s1 }
 0x289   :  { %v238_v41 = vpop.permute.xlu1 %237 }
 0x28a   :  { %v1521_v42 = vmul.f32 %v238_v41, %v223_v34 }
 0x28c   :  { %243 = vrot.lane.b32.xlu1 %v1521_v42, %s1424_s6 }
 0x2fe   :  { %v244_v43 = vpop.permute.xlu1 %243 }
 0x2ff   :  { %1156 = vmatmul.mubr.msk.f32.vlgmr.msra.gmra.mrb[2].mxu1 %vm144_vm6, %v244_v43 }
 0x300   :  { %1264 = vmatpush3.bf16.msra.mxu1 %v1478_v9  ;;  %1177 = vmatprep.mubr.msk.f32.mxu1 %vm1421_vm0, %v1422_v1 }
 0x301   :  { %1265 = vmatprep.subr.bf16.mxu1 %v1420_v0 }
 0x304   :  { %1267 = vmatpush3.bf16.msra.mxu1 %v1482_v15 }
 0x305   :  { %1274 = vmatprep.subr.bf16.mxu1 %v1420_v0 }
 0x3d2   :  { %v316_v45 = vpop.f32.mrb[2].mxu1 }
 0x3d3   :  { %v317_v46 = vadd.f32 %v316_v45, %v246_v44  ;;  %v1157_v47 = vpop.f32.mrb[3].mxu1 }
 0x3d4   :  { %v549_v47 = vrot.slane %v1505_v25, 4 }
 0x3d5   :  { %v320_v48 = vmul.f32 0.5, %v317_v46 }
 0x3d7   :  { %v321_v49 = vsel %vm1510_vm5, %v317_v46, %v320_v48 }
 0x3d8   :  { %1312 = vtanh.f32 %v321_v49 }
 0x3e2   :  { %v1313_v50 = vpop.eup %1312 }
 0x3e3   :  { %v323_v51 = vadd.f32 1.0, %v1313_v50 }
 0x3e5   :  { %v324_v52 = vmul.f32 0.5, %v323_v51 }
 0x3e7   :  { %v325_v53 = vsel %vm1510_vm5, %v1313_v50, %v324_v52 }
 0x3e8   :  { %328 = vrot.lane.b32.xlu0 %v325_v53, %s1423_s1  ;;  %v326_v56 = vmul.f32 %v325_v53, %v234_v39 }
 0x45a   :  { %v329_v54 = vpop.permute.xlu0 %328 }
 0x45b   :  { %v331_v55 = vmul.f32 %v329_v54, %v325_v53 }
 0x45d   :  { %333 = vrot.lane.b32.xlu1 %v331_v55, %s1424_s6 }
 0x4cf   :  { %v334_v57 = vpop.permute.xlu1 %333 }
 0x4d0   :  { %v336_v58 = vadd.f32 %v334_v57, %v326_v56 }
 0x4d2   :  { %1314 = vtanh.f32 %v336_v58 }
 0x4dc   :  { %v1315_v59 = vpop.eup %1314 }
 0x4dd   :  { %339 = vrot.lane.b32.xlu0 %v1315_v59, %s1423_s1 }
 0x54f   :  { %v340_v60 = vpop.permute.xlu0 %339 }
 0x550   :  { %v342_v61 = vmul.f32 %v340_v60, %v325_v53 }
 0x552   :  { %345 = vrot.lane.b32.xlu1 %v342_v61, %s1424_s6  ;;  %v343_v20 = vadd.f32 %v342_v61, %v1521_v42 }
 0x5c4   :  { %v346_v62 = vpop.permute.xlu1 %345 }
 0x5c5   :  { %1167 = vmatmul.mubr.msk.f32.vlgmr.msra.gmra.mrb[2].mxu0 %vm144_vm6, %v346_v62 }
 0x5c6   :  { %1270 = vmatpush3.bf16.msra.mxu0 %v1478_v9  ;;  %1188 = vmatprep.mubr.msk.f32.mxu0 %vm1421_vm0, %v1422_v1 }
 0x5c7   :  { %1271 = vmatprep.subr.bf16.mxu0 %v1420_v0 }
 0x5ca   :  { %1273 = vmatpush3.bf16.msra.mxu0 %v1482_v15 }
 0x5cb   :  { %1280 = vmatprep.subr.bf16.mxu0 %v1420_v0 }
 0x698   :  { %v417_v2 = vpop.f32.mrb[2].mxu0 }
 0x699   :  { %v418_v3 = vadd.f32 %v417_v2, %v347_v63  ;;  %v1168_v4 = vpop.f32.mrb[3].mxu0 }
 0x69b   :  { %v421_v5 = vmul.f32 0.5, %v418_v3 }
 0x69d   :  { %v422_v6 = vsel %vm1510_vm5, %v418_v3, %v421_v5  ;;  %v650_v5 = vrot.slane %v1505_v25, 5 }
 0x69e   :  { %1316 = vtanh.f32 %v422_v6 }
 0x6a8   :  { %v1317_v7 = vpop.eup %1316 }
 0x6a9   :  { %v424_v8 = vadd.f32 1.0, %v1317_v7 }
 0x6ab   :  { %v425_v10 = vmul.f32 0.5, %v424_v8 }
 0x6ad   :  { %v426_v11 = vsel %vm1510_vm5, %v1317_v7, %v425_v10 }
 0x6ae   :  { %429 = vrot.lane.b32.xlu0 %v426_v11, %s1423_s1  ;;  %v427_v14 = vmul.f32 %v426_v11, %v336_v58 }
 0x720   :  { %v430_v12 = vpop.permute.xlu0 %429 }
 0x721   :  { %v432_v13 = vmul.f32 %v430_v12, %v426_v11 }
 0x723   :  { %434 = vrot.lane.b32.xlu1 %v432_v13, %s1424_s6 }
 0x795   :  { %v435_v16 = vpop.permute.xlu1 %434 }
 0x796   :  { %v437_v17 = vadd.f32 %v435_v16, %v427_v14 }
 0x798   :  { %1318 = vtanh.f32 %v437_v17 }
 0x7a2   :  { %v1319_v18 = vpop.eup %1318 }
 0x7a3   :  { %440 = vrot.lane.b32.xlu0 %v1319_v18, %s1423_s1 }
 0x815   :  { %v441_v19 = vpop.permute.xlu0 %440 }
 0x816   :  { %v443_v21 = vmul.f32 %v441_v19, %v426_v11 }
 0x818   :  { %v444_v23 = vadd.f32 %v443_v21, %v343_v20  ;;  %446 = vrot.lane.b32.xlu1 %v443_v21, %s1424_s6 }
 0x88a   :  { %v447_v24 = vpop.permute.xlu1 %446 }
 0x88b   :  { %1178 = vmatmul.mubr.msk.f32.vlgmr.msra.gmra.mrb[4].mxu1 %vm144_vm6, %v447_v24 }
 0x88c   :  { %1276 = vmatpush3.bf16.msra.mxu1 %v1478_v9  ;;  %1199 = vmatprep.mubr.msk.f32.mxu1 %vm1421_vm0, %v1422_v1 }
 0x88d   :  { %1277 = vmatprep.subr.bf16.mxu1 %v1420_v0 }
 0x890   :  { %1279 = vmatpush3.bf16.msra.mxu1 %v1482_v15 }
 0x891   :  { %1286 = vmatprep.subr.bf16.mxu1 %v1420_v0 }
 0x95e   :  { %v518_v27 = vpop.f32.mrb[4].mxu1 }
 0x95f   :  { %v519_v29 = vadd.f32 %v518_v27, %v448_v26  ;;  %v1179_v30 = vpop.f32.mrb[5].mxu1  ;;  %v751_v27 = vrot.slane %v1505_v25, 6 }
 0x961   :  { %v522_v31 = vmul.f32 0.5, %v519_v29 }
 0x963   :  { %v523_v32 = vsel %vm1510_vm5, %v519_v29, %v522_v31 }
 0x964   :  { %1320 = vtanh.f32 %v523_v32 }
 0x96e   :  { %v1321_v33 = vpop.eup %1320 }
 0x96f   :  { %v525_v34 = vadd.f32 1.0, %v1321_v33 }
 0x971   :  { %v526_v35 = vmul.f32 0.5, %v525_v34 }
 0x973   :  { %v527_v36 = vsel %vm1510_vm5, %v1321_v33, %v526_v35 }
 0x974   :  { %530 = vrot.lane.b32.xlu0 %v527_v36, %s1423_s1  ;;  %v528_v39 = vmul.f32 %v527_v36, %v437_v17 }
 0x9e6   :  { %v531_v37 = vpop.permute.xlu0 %530 }
 0x9e7   :  { %v533_v38 = vmul.f32 %v531_v37, %v527_v36 }
 0x9e9   :  { %535 = vrot.lane.b32.xlu1 %v533_v38, %s1424_s6 }
 0xa5b   :  { %v536_v40 = vpop.permute.xlu1 %535 }
 0xa5c   :  { %v538_v41 = vadd.f32 %v536_v40, %v528_v39 }
 0xa5e   :  { %1322 = vtanh.f32 %v538_v41 }
 0xa68   :  { %v1323_v42 = vpop.eup %1322 }
 0xa69   :  { %541 = vrot.lane.b32.xlu0 %v1323_v42, %s1423_s1 }
 0xadb   :  { %v542_v43 = vpop.permute.xlu0 %541 }
 0xadc   :  { %v544_v44 = vmul.f32 %v542_v43, %v527_v36 }
 0xade   :  { %v545_v45 = vadd.f32 %v544_v44, %v444_v23  ;;  %547 = vrot.lane.b32.xlu1 %v544_v44, %s1424_s6 }
 0xb50   :  { %v548_v46 = vpop.permute.xlu1 %547 }
 0xb51   :  { %1189 = vmatmul.mubr.msk.f32.vlgmr.msra.gmra.mrb[4].mxu0 %vm144_vm6, %v548_v46 }
 0xb52   :  { %1282 = vmatpush3.bf16.msra.mxu0 %v1478_v9  ;;  %1210 = vmatprep.mubr.msk.f32.mxu0 %vm1421_vm0, %v1422_v1 }
 0xb53   :  { %1283 = vmatprep.subr.bf16.mxu0 %v1420_v0 }
 0xb56   :  { %1285 = vmatpush3.bf16.msra.mxu0 %v1482_v15 }
 0xb57   :  { %1292 = vmatprep.subr.bf16.mxu0 %v1420_v0 }
 0xc24   :  { %v619_v48 = vpop.f32.mrb[4].mxu0 }
 0xc25   :  { %v620_v49 = vadd.f32 %v619_v48, %v549_v47  ;;  %v1190_v50 = vpop.f32.mrb[5].mxu0  ;;  %v852_v47 = vrot.slane %v1505_v25, 7 }
 0xc27   :  { %v623_v51 = vmul.f32 0.5, %v620_v49 }
 0xc29   :  { %v624_v52 = vsel %vm1510_vm5, %v620_v49, %v623_v51 }
 0xc2a   :  { %1324 = vtanh.f32 %v624_v52 }
 0xc34   :  { %v1325_v53 = vpop.eup %1324 }
 0xc35   :  { %v626_v54 = vadd.f32 1.0, %v1325_v53 }
 0xc37   :  { %v627_v55 = vmul.f32 0.5, %v626_v54 }
 0xc39   :  { %v628_v56 = vsel %vm1510_vm5, %v1325_v53, %v627_v55 }
 0xc3a   :  { %631 = vrot.lane.b32.xlu0 %v628_v56, %s1423_s1  ;;  %v629_v59 = vmul.f32 %v628_v56, %v538_v41 }
 0xcac   :  { %v632_v57 = vpop.permute.xlu0 %631 }
 0xcad   :  { %v634_v58 = vmul.f32 %v632_v57, %v628_v56 }
 0xcaf   :  { %636 = vrot.lane.b32.xlu1 %v634_v58, %s1424_s6 }
 0xd21   :  { %v637_v60 = vpop.permute.xlu1 %636 }
 0xd22   :  { %v639_v61 = vadd.f32 %v637_v60, %v629_v59 }
 0xd24   :  { %1326 = vtanh.f32 %v639_v61 }
 0xd2e   :  { %v1327_v62 = vpop.eup %1326 }
 0xd2f   :  { %642 = vrot.lane.b32.xlu0 %v1327_v62, %s1423_s1  ;;  %v51_v62 = vld [vmem:[#allocation5 + $0x68] sm:$0xff] }
 0xda1   :  { %v643_v63 = vpop.permute.xlu0 %642 }
 0xda2   :  { %v645_v2 = vmul.f32 %v643_v63, %v628_v56  ;;  %v52_v63 = vld [vmem:[#allocation5 + $0x70] sm:$0xff] }
 0xda4   :  { %v646_v3 = vadd.f32 %v645_v2, %v545_v45  ;;  %648 = vrot.lane.b32.xlu1 %v645_v2, %s1424_s6 }
 0xe16   :  { %v649_v4 = vpop.permute.xlu1 %648 }
 0xe17   :  { %1200 = vmatmul.mubr.msk.f32.vlgmr.msra.gmra.mrb[6].mxu1 %vm144_vm6, %v649_v4 }
 0xe18   :  { %1288 = vmatpush3.bf16.msra.mxu1 %v1478_v9  ;;  %1221 = vmatprep.mubr.msk.f32.mxu1 %vm1421_vm0, %v1422_v1 }
 0xe19   :  { %1289 = vmatprep.subr.bf16.mxu1 %v1420_v0 }
 0xe1c   :  { %1291 = vmatpush3.bf16.msra.mxu1 %v1482_v15 }
 0xeea   :  { %v720_v6 = vpop.f32.mrb[6].mxu1 }
 0xeeb   :  { %v721_v7 = vadd.f32 %v720_v6, %v650_v5  ;;  %v1201_v8 = vpop.f32.mrb[7].mxu1 }
 0xeed   :  { %v724_v10 = vmul.f32 0.5, %v721_v7 }
 0xeef   :  { %v725_v11 = vsel %vm1510_vm5, %v721_v7, %v724_v10  ;;  %v54_v10 = vld [vmem:[#allocation5 + $0x80] sm:$0x1] }
 0xef0   :  { %1328 = vtanh.f32 %v725_v11 }
 0xefa   :  { %v1329_v12 = vpop.eup %1328 }
 0xefb   :  { %v727_v13 = vadd.f32 1.0, %v1329_v12 }
 0xefd   :  { %v728_v9 = vmul.f32 0.5, %v727_v13 }
 0xeff   :  { %v729_v14 = vsel %vm1510_vm5, %v1329_v12, %v728_v9 }
 0xf00   :  { %732 = vrot.lane.b32.xlu0 %v729_v14, %s1423_s1  ;;  %v730_v17 = vmul.f32 %v729_v14, %v639_v61  ;;  %v50_v61 = vld [vmem:[#allocation5 + $0x60] sm:$0xff] }
 0xf01   :  { %v1293_v2 = vpack.c.bf16 %v51_v62, %v50_v61 }
 0xf72   :  { %v733_v16 = vpop.permute.xlu0 %732 }
 0xf73   :  { %v735_v15 = vmul.f32 %v733_v16, %v729_v14 }
 0xf75   :  { %737 = vrot.lane.b32.xlu1 %v735_v15, %s1424_s6 }
 0xfe7   :  { %v738_v18 = vpop.permute.xlu1 %737 }
 0xfe8   :  { %v740_v19 = vadd.f32 %v738_v18, %v730_v17 }
 0xfea   :  { %1330 = vtanh.f32 %v740_v19 }
 0xff4   :  { %v1331_v20 = vpop.eup %1330 }
 0xff5   :  { %743 = vrot.lane.b32.xlu0 %v1331_v20, %s1423_s1 }
0x1067   :  { %v744_v21 = vpop.permute.xlu0 %743 }
0x1068   :  { %v746_v23 = vmul.f32 %v744_v21, %v729_v14 }
0x106a   :  { %v747_v24 = vadd.f32 %v746_v23, %v646_v3  ;;  %749 = vrot.lane.b32.xlu1 %v746_v23, %s1424_s6  ;;  %v53_v3 = vld [vmem:[#allocation5 + $0x78] sm:$0xff] }
0x106b   :  { %v1296_v4 = vpack.c.bf16 %v53_v3, %v52_v63 }
0x10dc   :  { %v750_v26 = vpop.permute.xlu1 %749 }
0x10dd   :  { %1211 = vmatmul.mubr.msk.f32.vlgmr.msra.gmra.mrb[6].mxu0 %vm144_vm6, %v750_v26 }
0x10de   :  { %1232 = vmatprep.mubr.msk.f32.mxu0 %vm1421_vm0, %v1422_v1  ;;  %1294 = vmatpush3.bf16.msra.mxu0 %v1293_v2 }
0x10df   :  { %1295 = vmatprep.subr.bf16.mxu0 %v1420_v0 }
0x10e2   :  { %1297 = vmatpush3.bf16.msra.mxu0 %v1296_v4 }
0x11b0   :  { %v821_v29 = vpop.f32.mrb[6].mxu0 }
0x11b1   :  { %v822_v30 = vadd.f32 %v821_v29, %v751_v27  ;;  %v1212_v31 = vpop.f32.mrb[7].mxu0 }
0x11b3   :  { %v825_v32 = vmul.f32 0.5, %v822_v30 }
0x11b5   :  { %v826_v33 = vsel %vm1510_vm5, %v822_v30, %v825_v32 }
0x11b6   :  { %1332 = vtanh.f32 %v826_v33 }
0x11c0   :  { %v1333_v34 = vpop.eup %1332 }
0x11c1   :  { %v828_v35 = vadd.f32 1.0, %v1333_v34 }
0x11c3   :  { %v829_v36 = vmul.f32 0.5, %v828_v35 }
0x11c5   :  { %v830_v37 = vsel %vm1510_vm5, %v1333_v34, %v829_v36 }
0x11c6   :  { %833 = vrot.lane.b32.xlu0 %v830_v37, %s1423_s1  ;;  %v831_v39 = vmul.f32 %v830_v37, %v740_v19 }
0x1238   :  { %v834_v38 = vpop.permute.xlu0 %833 }
0x1239   :  { %v836_v1 = vmul.f32 %v834_v38, %v830_v37 }
0x123b   :  { %838 = vrot.lane.b32.xlu1 %v836_v1, %s1424_s6 }
0x12ad   :  { %v839_v40 = vpop.permute.xlu1 %838 }
0x12ae   :  { %v841_v41 = vadd.f32 %v839_v40, %v831_v39 }
0x12b0   :  { %1334 = vtanh.f32 %v841_v41 }
0x12ba   :  { %v1335_v42 = vpop.eup %1334 }
0x12bb   :  { %844 = vrot.lane.b32.xlu0 %v1335_v42, %s1423_s1 }
0x132d   :  { %v845_v43 = vpop.permute.xlu0 %844 }
0x132e   :  { %v847_v44 = vmul.f32 %v845_v43, %v830_v37 }
0x1330   :  { %v848_v45 = vadd.f32 %v847_v44, %v747_v24  ;;  %850 = vrot.lane.b32.xlu1 %v847_v44, %s1424_s6 }
0x13a2   :  { %v851_v46 = vpop.permute.xlu1 %850 }
0x13a3   :  { %1222 = vmatmul.mubr.msk.f32.vlgmr.msra.gmra.mrb[8].mxu1 %vm144_vm6, %v851_v46 }
0x1476   :  { %v922_v48 = vpop.f32.mrb[8].mxu1 }
0x1477   :  { %v923_v49 = vadd.f32 %v922_v48, %v852_v47  ;;  %v1223_v50 = vpop.f32.mrb[9].mxu1 }
0x1479   :  { %v926_v51 = vmul.f32 0.5, %v923_v49 }
0x147b   :  { %v927_v52 = vsel %vm1510_vm5, %v923_v49, %v926_v51 }
0x147c   :  { %1336 = vtanh.f32 %v927_v52 }
0x1486   :  { %v1337_v53 = vpop.eup %1336 }
0x1487   :  { %v929_v54 = vadd.f32 1.0, %v1337_v53 }
0x1489   :  { %v930_v55 = vmul.f32 0.5, %v929_v54 }
0x148b   :  { %v931_v56 = vsel %vm1510_vm5, %v1337_v53, %v930_v55 }
0x148c   :  { %934 = vrot.lane.b32.xlu0 %v931_v56, %s1423_s1  ;;  %v932_v25 = vmul.f32 %v931_v56, %v841_v41 }
0x14fe   :  { %v935_v57 = vpop.permute.xlu0 %934 }
0x14ff   :  { %v937_v58 = vmul.f32 %v935_v57, %v931_v56 }
0x1501   :  { %939 = vrot.lane.b32.xlu1 %v937_v58, %s1424_s6 }
0x1573   :  { %v940_v59 = vpop.permute.xlu1 %939 }
0x1574   :  { %v942_v60 = vadd.f32 %v940_v59, %v932_v25 }
0x1576   :  { %1338 = vtanh.f32 %v942_v60 }
0x1580   :  { %v1339_v28 = vpop.eup %1338 }
0x1581   :  { %945 = vrot.lane.b32.xlu0 %v1339_v28, %s1423_s1 }
0x15f3   :  { %v946_v5 = vpop.permute.xlu0 %945 }
0x15f4   :  { %v948_v6 = vmul.f32 %v946_v5, %v931_v56 }
0x15f6   :  { %v949_v7 = vadd.f32 %v948_v6, %v848_v45 }
0x15f8   :  { %951 = vrot.lane.b32.xlu1 %v949_v7, %s1424_s6 }
0x166a   :  { %v952_v8 = vpop.permute.xlu1 %951 }
0x166b   :  { %1233 = vmatmul.mubr.msk.f32.vlgmr.msra.gmra.mrb[8].mxu0 %vm144_vm6, %v952_v8 }
0x173e   :  { %v1021_v11 = vpop.f32.mrb[8].mxu0 }
0x173f   :  { %v1022_v12 = vadd.f32 %v1021_v11, %v54_v10  ;;  %v1234_v13 = vpop.f32.mrb[9].mxu0 }
0x1741   :  { %v1025_v0 = vsel %vm143_vm7, %v1022_v12, -1e+30 }
0x1742   :  { %v1027_v9 = vsel %vm1026_vm8, %v1025_v0, -inf }
0x1743   :  { %1028 = vmax.xlane.f32.xlu0 %v1027_v9 }
0x17d0   :  { %v1029_v14 = vpop.xlane.xlu0 %1028 }
0x17d1   :  { %v1030_v16 = vsub.f32 %v1025_v0, %v1029_v14 }
0x17d3   :  { %v1031_v15 = vmul.f32 1.442695, %v1030_v16 }
0x17d5   :  { %1340 = vpow2.f32 %v1031_v15 }
0x17df   :  { %v1341_v17 = vpop.eup %1340 }
0x17e0   :  { %v1033_v18 = vsel %vm1026_vm8, %v1341_v17, 0.0 }
0x17e1   :  { %1034 = vadd.xlane.f32.xlu1 %v1033_v18 }
0x186e   :  { %v1035_v19 = vpop.xlane.xlu1 %1034 }
0x186f   :  { %1342 = vrcp.f32 %v1035_v19 }
0x1879   :  { %v1343_v20 = vpop.eup %1342 }
0x187a   :  { %v1037_v21 = vmul.f32 %v1343_v20, %v1341_v17 }
0x187c   :  { %1038 = vst [vmem:[#allocation7] sm:$0x1] %v1037_v21 }
0x187d   :  { %1399 = shalt.err (!%p1396_p6)
}
0x187e   :  { %s1400_s13 = scalar_lea.hbm %s1644_s2, 16 }
0x187f   :  { %p1401_p7 = scmp.ne.s32.totalorder %s1644_s2, %s1400_s13  ;;  %p1404_p8 = scmp.lt.u32.totalorder %s1400_s13, %s1644_s2 }
0x1881   :  { %p1406_p9 = pnand %p1404_p8, %p1401_p7 }
0x1883   :  { %1409 = shalt.err (!%p1406_p9)
}
0x1884   :  { %1048 = dma.vmem_to_hbm [thread:$0]  %s1046_s8, 16, %s1644_s2, [#allocation4]  }
0x1885   :  { %1414 = dma.done.wait [#allocation4], 16  }
0x1886   :  { %1415 = vsyncadd [#allocation4], 4294967280 }
0x1887   :  { %1052 = vsyncpa [#allocation3], 1 }
0x1888   :  { %1053 = vsyncpa [#allocation6], 1 }
0x1889   :  { %1054 = vsyncpa [#allocation4], 1 }

</bundles_post_ra>
